<compile_context>
chip_gen: v6e
topology: v6e:2x2x1
jax: 0.10.0
libtpu: 0.0.40
codegen_flags: <defaults>
</compile_context>

<pallas_src>
from functools import partial

import jax
import jax.numpy as jnp
from jax import lax
from jax.experimental import pallas as pl
from jax.experimental.pallas import tpu as pltpu


# ---------------------------------------------------------------------------
# Kernel: entire ensemble MLP + ensemble/batch mean in one invocation.
# ---------------------------------------------------------------------------
def _multihead_fused_kernel(x_ref, w_ref, b_ref, o_ref, *,
                            in_rows, n_mid, D, out_dim):
    # x_ref: (B, in_rows)                input, columns zero-padded to in_rows
    # w_ref: (in_rows + (n_mid+1)*D, D)  weight slab:
    #          rows [0:in_rows]                  layer-1 weights (zero-pad rows)
    #          rows [in_rows + l*D : +D]         mid layer l, block-diagonal
    #          rows [in_rows + n_mid*D : +D]     folded output @ reducer (lane-padded)
    # b_ref: (n_mid + 2, D)              bias slab (last row = folded output bias)
    # o_ref: (1, out_dim)
    b_all = b_ref[...]

    # Hidden layer 1 (all ensemble members packed along the lane dimension).
    h = jnp.dot(x_ref[...], w_ref[0:in_rows, :],
                preferred_element_type=jnp.float32)
    h = jnp.maximum(h + b_all[0:1, :], 0.0)                      # (B, D)

    # Mid hidden layers: block-diagonal (D, D) matmuls, one MXU pass each.
    for l in range(n_mid):                                       # static unroll (small)
        lo = in_rows + l * D
        h = jnp.dot(h, w_ref[lo:lo + D, :], preferred_element_type=jnp.float32)
        h = jnp.maximum(h + b_all[l + 1:l + 2, :], 0.0)

    # Batch mean first (linear -> commutes with the final affine map), then one
    # dot with the pre-folded [output layer @ ensemble-mean reducer] matrix and
    # its folded bias.  Exactly reproduces
    # torch.mean(torch.vstack([model(x) for model in models]), dim=0).
    hm = jnp.mean(h, axis=0, keepdims=True)                      # (1, D)
    lo = in_rows + n_mid * D
    y = jnp.dot(hm, w_ref[lo:lo + D, :], preferred_element_type=jnp.float32)
    y = y + b_all[n_mid + 1:n_mid + 2, :]
    o_ref[...] = y[:, :out_dim].astype(o_ref.dtype)


# ---------------------------------------------------------------------------
# Wrapper: pack per-member Linear weights once into lane-dense / block-diagonal
# slabs (weight slab + bias slab), then call the fused kernel.
# ---------------------------------------------------------------------------
def pack_params(params, *, ens, n_units, out_dim):
    w1, b1, wm, bm, wo, bo = (params[k] for k in ("w1", "b1", "wm", "bm", "wo", "bo"))
    n_mid = wm.shape[0]
    in_dim = w1.shape[-1]
    D = ens * n_units
    dt = w1.dtype
    in_rows = max(8, ((in_dim + 7) // 8) * 8)          # sublane-pad layer-1 rows

    # Layer 1: (in_rows, D), pre-transposed, member-major lanes, zero-pad rows.
    w1p = jnp.zeros((in_rows, D), dt).at[:in_dim, :].set(
        jnp.transpose(w1, (2, 0, 1)).reshape(in_dim, D))

    # Mid layers: block-diagonal (D, D) per layer.
    eye_e = jnp.eye(ens, dtype=dt)
    wm_t = jnp.transpose(wm, (0, 1, 3, 2))             # (n_mid, ens, in, out)
    wmp = jnp.einsum("gh,lgio->lgiho", eye_e, wm_t).reshape(n_mid * D, D)

    # Output layer folded with the ensemble-mean reducer, lane-padded to D:
    #   (h @ block_diag(wo^T)) @ red  ==  h @ (wo^T reshaped member-major / ens)
    wo_red = jnp.transpose(wo, (0, 2, 1)).reshape(D, out_dim) / float(ens)
    wo_red = jnp.zeros((D, D), dt).at[:, :out_dim].set(wo_red)

    w_slab = jnp.concatenate([w1p, wmp, wo_red], axis=0)   # (in_rows+(n_mid+1)*D, D)

    # Bias slab: row 0 = b1, rows 1..n_mid = bm, last row = mean_g bo (padded).
    bo_red = jnp.zeros((1, D), dt).at[0, :out_dim].set(jnp.mean(bo, axis=0))
    b_slab = jnp.concatenate(
        [b1.reshape(1, D), bm.reshape(n_mid, D), bo_red], axis=0)  # (n_mid+2, D)

    cfg = dict(in_rows=in_rows, n_mid=n_mid, D=D, out_dim=out_dim, in_dim=in_dim)
    return w_slab, b_slab, cfg


def multihead_forward(x, packed):
    w_slab, b_slab, cfg = packed
    in_rows, n_mid, D, out_dim, in_dim = (
        cfg[k] for k in ("in_rows", "n_mid", "D", "out_dim", "in_dim"))
    B = x.shape[0]
    xp = jnp.zeros((B, in_rows), x.dtype).at[:, :in_dim].set(x)

    flops = 2 * B * in_rows * D + n_mid * 2 * B * D * D + 2 * D * D
    bytes_accessed = 4 * (xp.size + w_slab.size + b_slab.size + out_dim)

    kernel = partial(_multihead_fused_kernel,
                     in_rows=in_rows, n_mid=n_mid, D=D, out_dim=out_dim)
    vmem = pltpu.MemorySpace.VMEM
    out = pl.pallas_call(
        kernel,
        out_shape=jax.ShapeDtypeStruct((1, out_dim), x.dtype),
        in_specs=[pl.BlockSpec(memory_space=vmem)] * 3,
        out_specs=pl.BlockSpec(memory_space=vmem),
        cost_estimate=pl.CostEstimate(flops=int(flops), transcendentals=0,
                                      bytes_accessed=int(bytes_accessed)),
        compiler_params=pltpu.CompilerParams(),
    )(xp, w_slab, b_slab)
    return out[0]                      # (out_dim,), same as torch forward on 2-D input


# ---------------------------------------------------------------------------
# Parameter init matching nn.Linear defaults (uniform +-1/sqrt(fan_in)),
# stored in torch (out_features, in_features) convention per member.
# ---------------------------------------------------------------------------
def init_params(key, ens, in_dim, n_units, n_layers, out_dim):
    assert n_layers > 2, "only the deep (len(arch) > 2) branch is implemented"
    n_mid = n_layers - 1
    ks = jax.random.split(key, 6)

    def u(k, shape, fan_in):
        bound = 1.0 / float(fan_in) ** 0.5
        return jax.random.uniform(k, shape, jnp.float32, -bound, bound)

    return dict(
        w1=u(ks[0], (ens, n_units, in_dim), in_dim),
        b1=u(ks[1], (ens, n_units), in_dim),
        wm=u(ks[2], (n_mid, ens, n_units, n_units), n_units),
        bm=u(ks[3], (n_mid, ens, n_units), n_units),
        wo=u(ks[4], (ens, out_dim, n_units), n_units),
        bo=u(ks[5], (ens, out_dim), n_units),
    )


def reference_forward(x, params):
    """Pure-JAX mirror of MultiHead.forward: mean(vstack([m(x) for m in models]), dim=0)."""
    w1, b1, wm, bm, wo, bo = (params[k] for k in ("w1", "b1", "wm", "bm", "wo", "bo"))
    ens, n_mid = w1.shape[0], wm.shape[0]
    hp = lax.Precision.HIGHEST
    outs = []
    for g in range(ens):
        h = jnp.maximum(jnp.dot(x, w1[g].T, precision=hp) + b1[g], 0.0)
        for l in range(n_mid):
            h = jnp.maximum(jnp.dot(h, wm[l, g].T, precision=hp) + bm[l, g], 0.0)
        outs.append(jnp.dot(h, wo[g].T, precision=hp) + bo[g])
    stacked = jnp.concatenate(outs, axis=0)       # torch.vstack -> (ens*B, out_dim)
    return jnp.mean(stacked, axis=0)              # mean over dim 0 -> (out_dim,)


if __name__ == "__main__":
    # Small shapes consistent with MultiHead: batch=2, in_dim=6, n_units=32,
    # n_layers=3 (>2 so the deep branch is used), ens_size=4, out_dim=8.
    # ens_size * n_units = 128 -> lane-dense packing (a full 128-lane pass;
    # note v6e/v7x MXUs are 256-wide, so at these shapes the kernel is
    # overhead-bound regardless -- hence the DMA-count / fold optimizations).
    ens_size, n_units, n_layers, in_dim, out_dim, B = 4, 32, 3, 6, 8, 2

    key = jax.random.PRNGKey(0)
    kx, kp = jax.random.split(key)
    x = jax.random.normal(kx, (B, in_dim), jnp.float32)
    params = init_params(kp, ens_size, in_dim, n_units, n_layers, out_dim)

    packed = pack_params(params, ens=ens_size, n_units=n_units, out_dim=out_dim)
    out = multihead_forward(x, packed)
    out = jax.block_until_ready(out)

    ref = reference_forward(x, params)
    assert out.shape == (out_dim,), out.shape
    assert jnp.allclose(out, ref, atol=1e-2, rtol=1e-2), float(jnp.max(jnp.abs(out - ref)))
    print("KERNEL_OK")
</pallas_src>

<mosaic_0001>
module attributes {stable_mosaic.version = 11 : i64} {
  func.func @_multihead_fused_kernel(%arg0: memref<2x8xf32, #tpu.memory_space<vmem>>, %arg1: memref<392x128xf32, #tpu.memory_space<vmem>>, %arg2: memref<4x128xf32, #tpu.memory_space<vmem>>, %arg3: memref<1x8xf32, #tpu.memory_space<vmem>>) attributes {dimension_semantics = [], scalar_prefetch = 0 : i64, scratch_operands = 0 : i64, tpu.core_type = #tpu.core_type<tc>} {
    %c0 = arith.constant 0 : index
    %c0_0 = arith.constant 0 : index
    %0 = vector.load %arg2[%c0, %c0_0] : memref<4x128xf32, #tpu.memory_space<vmem>>, vector<4x128xf32>
    %c0_1 = arith.constant 0 : index
    %c0_2 = arith.constant 0 : index
    %1 = vector.load %arg0[%c0_1, %c0_2] : memref<2x8xf32, #tpu.memory_space<vmem>>, vector<2x8xf32>
    %c0_3 = arith.constant 0 : index
    %c0_4 = arith.constant 0 : index
    %2 = vector.load %arg1[%c0_3, %c0_4] : memref<392x128xf32, #tpu.memory_space<vmem>>, vector<8x128xf32>
    %cst = arith.constant dense<0.000000e+00> : vector<2x128xf32>
    %3 = tpu.matmul %1, %2, %cst {dimension_numbers = #tpu.dot_dimension_numbers<[1], [0], [0], [1], [0, 0, 1, 1], [], []>} : vector<2x8xf32>, vector<8x128xf32>, vector<2x128xf32> -> vector<2x128xf32>
    %4 = vector.extract_strided_slice %0 {offsets = [0, 0], sizes = [1, 128], strides = [1, 1]} : vector<4x128xf32> to vector<1x128xf32>
    %5 = vector.broadcast %4 : vector<1x128xf32> to vector<2x128xf32>
    %6 = arith.addf %3, %5 : vector<2x128xf32>
    %cst_5 = arith.constant 0.000000e+00 : f32
    %7 = vector.broadcast %cst_5 : f32 to vector<2x128xf32>
    %8 = arith.maximumf %6, %7 : vector<2x128xf32>
    %c8 = arith.constant 8 : index
    %c0_6 = arith.constant 0 : index
    %9 = vector.load %arg1[%c8, %c0_6] : memref<392x128xf32, #tpu.memory_space<vmem>>, vector<128x128xf32>
    %cst_7 = arith.constant dense<0.000000e+00> : vector<2x128xf32>
    %10 = tpu.matmul %8, %9, %cst_7 {dimension_numbers = #tpu.dot_dimension_numbers<[1], [0], [0], [1], [0, 0, 1, 1], [], []>} : vector<2x128xf32>, vector<128x128xf32>, vector<2x128xf32> -> vector<2x128xf32>
    %11 = vector.extract_strided_slice %0 {offsets = [1, 0], sizes = [1, 128], strides = [1, 1]} : vector<4x128xf32> to vector<1x128xf32>
    %12 = vector.broadcast %11 : vector<1x128xf32> to vector<2x128xf32>
    %13 = arith.addf %10, %12 : vector<2x128xf32>
    %cst_8 = arith.constant 0.000000e+00 : f32
    %14 = vector.broadcast %cst_8 : f32 to vector<2x128xf32>
    %15 = arith.maximumf %13, %14 : vector<2x128xf32>
    %c136 = arith.constant 136 : index
    %c0_9 = arith.constant 0 : index
    %16 = vector.load %arg1[%c136, %c0_9] : memref<392x128xf32, #tpu.memory_space<vmem>>, vector<128x128xf32>
    %cst_10 = arith.constant dense<0.000000e+00> : vector<2x128xf32>
    %17 = tpu.matmul %15, %16, %cst_10 {dimension_numbers = #tpu.dot_dimension_numbers<[1], [0], [0], [1], [0, 0, 1, 1], [], []>} : vector<2x128xf32>, vector<128x128xf32>, vector<2x128xf32> -> vector<2x128xf32>
    %18 = vector.extract_strided_slice %0 {offsets = [2, 0], sizes = [1, 128], strides = [1, 1]} : vector<4x128xf32> to vector<1x128xf32>
    %19 = vector.broadcast %18 : vector<1x128xf32> to vector<2x128xf32>
    %20 = arith.addf %17, %19 : vector<2x128xf32>
    %cst_11 = arith.constant 0.000000e+00 : f32
    %21 = vector.broadcast %cst_11 : f32 to vector<2x128xf32>
    %22 = arith.maximumf %20, %21 : vector<2x128xf32>
    %cst_12 = arith.constant dense<0.000000e+00> : vector<128xf32>
    %23 = vector.multi_reduction <add>, %22, %cst_12 [0] : vector<2x128xf32> to vector<128xf32>
    %24 = vector.shape_cast %23 : vector<128xf32> to vector<1x128xf32>
    %cst_13 = arith.constant 2.000000e+00 : f32
    %25 = vector.broadcast %cst_13 : f32 to vector<1x128xf32>
    %26 = arith.divf %24, %25 : vector<1x128xf32>
    %c264 = arith.constant 264 : index
    %c0_14 = arith.constant 0 : index
    %27 = vector.load %arg1[%c264, %c0_14] : memref<392x128xf32, #tpu.memory_space<vmem>>, vector<128x128xf32>
    %cst_15 = arith.constant dense<0.000000e+00> : vector<1x128xf32>
    %28 = tpu.matmul %26, %27, %cst_15 {dimension_numbers = #tpu.dot_dimension_numbers<[1], [0], [0], [1], [0, 0, 1, 1], [], []>} : vector<1x128xf32>, vector<128x128xf32>, vector<1x128xf32> -> vector<1x128xf32>
    %29 = vector.extract_strided_slice %0 {offsets = [3, 0], sizes = [1, 128], strides = [1, 1]} : vector<4x128xf32> to vector<1x128xf32>
    %30 = arith.addf %28, %29 : vector<1x128xf32>
    %31 = vector.extract_strided_slice %30 {offsets = [0, 0], sizes = [1, 8], strides = [1, 1]} : vector<1x128xf32> to vector<1x8xf32>
    %c0_16 = arith.constant 0 : index
    %c0_17 = arith.constant 0 : index
    %32 = vector.load %arg3[%c0_16, %c0_17] : memref<1x8xf32, #tpu.memory_space<vmem>>, vector<1x8xf32>
    tpu.vector_store %arg3[%c0_16, %c0_17], %31 {strides = array<i32>} : memref<1x8xf32, #tpu.memory_space<vmem>>, vector<1x8xf32>,
    return
  }
}

</mosaic_0001>

<bundles_post_ra>
// kernel: tpu_custom_call.1
= control target key start
LH: loop header
LB: loop body
LE: loop exit
PB: predicated region body
PF: predicated region fallthrough
CT: control target
= control target key end

     0   :  { %8 = vsyncpa [#allocation3], 0  ;;  %s799_s0 = inlined_call_operand.hbm [shape: f32[2,8], index: 0, kind: input, shape index: {}]   ;;  %s800_s1 = inlined_call_operand.hbm [shape: f32[392,128], index: 1, kind: input, shape index: {}]   ;;  %s801_s2 = inlined_call_operand.hbm [shape: f32[4,128], index: 2, kind: input, shape index: {}]   ;;  %s802_s3 = inlined_call_operand.hbm [shape: f32[1,8], index: 3, kind: output, shape index: {}]  }
   0x1   :  { %9 = vsyncpa [#allocation6], 0 }
   0x2   :  { %10 = vsyncpa [#allocation4], 0  ;;  %s691_s12 = smov [#allocation5]  }
   0x3   :  { %s26_s13 = sshll.u32 %s691_s12, 4  ;;  %s27_s13 = int_to_ptr.vmem [resolvable:$true] %s26_s13 }
   0x4   :  { %s613_s14 = scalar_lea.vmem %s27_s13, 6272  ;;  %p618_p1 = scmp.lt.s32.totalorder %s27_s13, %s27_s13 }
   0x5   :  { %p614_p0 = scmp.ne.s32.totalorder %s27_s13, %s613_s14  ;;  %p619_p2 = scmp.lt.s32.totalorder %s613_s14, %s613_s14 }
   0x7   :  { %p620_p3 = por %p619_p2, %p618_p1 }
   0x9   :  { %p621_p4 = pnand %p620_p3, %p614_p0 }
   0xb   :  { %624 = shalt.err (!%p621_p4)
}
   0xc   :  { %s692_s15 = smov 128   ;;  %s693_s16 = smov 8  }
   0xd   :  { %32 = dma.hbm_to_vmem [thread:$0]  %s800_s1, 6272, %s27_s13, [#allocation6], %s692_s15, %s692_s15, %s693_s16  }
   0xe   :  { %s694_s19 = smov [#allocation2]   ;;  %s695_s21 = smov [#allocation7]  }
   0xf   :  { %s17_s20 = sshll.u32 %s694_s19, 4  ;;  %s39_s22 = sshll.u32 %s695_s21, 4  ;;  %s18_s20 = int_to_ptr.vmem [resolvable:$true] %s17_s20  ;;  %s40_s22 = int_to_ptr.vmem [resolvable:$true] %s39_s22 }
  0x10   :  { %s633_s23 = scalar_lea.vmem %s18_s20, 32  ;;  %p638_p6 = scmp.lt.s32.totalorder %s18_s20, %s18_s20 }
  0x11   :  { %p634_p5 = scmp.ne.s32.totalorder %s18_s20, %s633_s23  ;;  %p639_p7 = scmp.lt.s32.totalorder %s633_s23, %s633_s23 }
  0x13   :  { %p640_p8 = por %p639_p7, %p638_p6 }
  0x15   :  { %p641_p9 = pnand %p640_p8, %p634_p5 }
  0x17   :  { %644 = shalt.err (!%p641_p9)
}
  0x18   :  { %20 = dma.hbm_to_vmem [thread:$0]  %s799_s0, 32, %s18_s20, [#allocation3]  }
  0x19   :  { %s653_s26 = scalar_lea.vmem %s40_s22, 64  ;;  %p658_p11 = scmp.lt.s32.totalorder %s40_s22, %s40_s22 }
  0x1a   :  { %p654_p10 = scmp.ne.s32.totalorder %s40_s22, %s653_s26  ;;  %p659_p12 = scmp.lt.s32.totalorder %s653_s26, %s653_s26 }
  0x1c   :  { %p660_p13 = por %p659_p12, %p658_p11 }
  0x1e   :  { %p661_p0 = pnand %p660_p13, %p654_p10 }
  0x20   :  { %664 = shalt.err (!%p661_p0)
}
  0x21   :  { %42 = dma.hbm_to_vmem [thread:$0]  %s801_s2, 64, %s40_s22, [#allocation6]  }
  0x22   :  { %685 = dma.done.wait [#allocation3], 32  }
  0x23   :  { %686 = vsyncadd [#allocation3], 4294967264 }
  0x24   :  { %687 = dma.done.wait [#allocation6], 6336  }
  0x25   :  { %688 = vsyncadd [#allocation6], 4294960960  ;;  %v696_v0 = vmov 0.0   ;;  %vm697_vm0 = vmmov 0   ;;  %vm59_vm1 = vcmask 64512   ;;  %v54_v1 = vld [vmem:[#allocation5] sm:$0xff]  ;;  %v55_v32 = vlaneseq }
  0x26   :  { %487 = vmatprep.subr.mxu0 %v696_v0  ;;  %489 = vmatprep.mubr.msk.f32.mxu0 %vm697_vm0, %v696_v0  ;;  %v53_v2 = vld [vmem:[#allocation2] sm:$0x3]  ;;  %v149_v3 = vld [vmem:[#allocation5 + $0x80] sm:$0xff]  ;;  %v147_v5 = vld [vmem:[#allocation5 + $0x70] sm:$0xff]  ;;  %vm316_vm2 = vcmask 1041408   ;;  %s698_s0 = smov [#allocation8]  }
  0x27   :  { %492 = vmatprep.subr.mxu1 %v696_v0  ;;  %524 = vmatprep.mubr.msk.f32.mxu1 %vm697_vm0, %v696_v0  ;;  %v148_v4 = vld [vmem:[#allocation5 + $0x78] sm:$0xff]  ;;  %v146_v6 = vld [vmem:[#allocation5 + $0x68] sm:$0xff]  ;;  %v145_v7 = vld [vmem:[#allocation5 + $0x60] sm:$0xff]  ;;  %v766_v33 = vshrl.u32 %v55_v32, 7  ;;  %s423_s2 = sshll.u32 %s698_s0, 4  ;;  %vm415_vm3 = vcmask 57344   ;;  %s424_s2 = int_to_ptr.vmem [resolvable:$true] %s423_s2 }
  0x28   :  { %488 = vmatpush3.msra.mxu0 %v54_v1  ;;  %493 = vmatpush3.msra.mxu1 %v149_v3  ;;  %v144_v8 = vld [vmem:[#allocation5 + $0x58] sm:$0xff]  ;;  %v143_v9 = vld [vmem:[#allocation5 + $0x50] sm:$0xff]  ;;  %v142_v10 = vld [vmem:[#allocation5 + $0x48] sm:$0xff]  ;;  %s665_s28 = scalar_lea.vmem %s424_s2, 16  ;;  %s669_s29 = scalar_lea.vmem %s424_s2, 32 }
  0x29   :  { %490 = vmatmul.mubr.msk.f32.vlgmr.msra.gmra.mxu0 %vm59_vm1, %v53_v2  ;;  %494 = vmatprep.subr.mxu1 %v696_v0  ;;  %v141_v11 = vld [vmem:[#allocation5 + $0x40] sm:$0xff]  ;;  %v140_v12 = vld [vmem:[#allocation5 + $0x38] sm:$0xff]  ;;  %v139_v13 = vld [vmem:[#allocation5 + $0x30] sm:$0xff]  ;;  %v57_v34 = vsub.s32 0, %v766_v33  ;;  %v152_v50 = vsub.s32 1, %v766_v33  ;;  %v243_v3 = vsub.s32 2, %v766_v33  ;;  %p666_p1 = scmp.ne.s32.totalorder %s424_s2, %s665_s28  ;;  %p670_p2 = scmp.lt.s32.totalorder %s424_s2, %s424_s2 }
  0x2a   :  { %495 = vmatpush3.msra.mxu1 %v148_v4  ;;  %527 = vmatprep.subr.mxu0 %v696_v0  ;;  %v138_v14 = vld [vmem:[#allocation5 + $0x28] sm:$0xff]  ;;  %v137_v15 = vld [vmem:[#allocation5 + $0x20] sm:$0xff]  ;;  %v136_v16 = vld [vmem:[#allocation5 + $0x18] sm:$0xff]  ;;  %p671_p3 = scmp.lt.s32.totalorder %s669_s29, %s665_s28 }
  0x2b   :  { %496 = vmatprep.subr.mxu1 %v696_v0  ;;  %559 = vmatprep.mubr.msk.f32.mxu0 %vm697_vm0, %v696_v0  ;;  %v135_v17 = vld [vmem:[#allocation5 + $0x10] sm:$0xff]  ;;  %v134_v18 = vld [vmem:[#allocation5 + $0x8] sm:$0xff]  ;;  %v240_v19 = vld [vmem:[#allocation5 + $0x100] sm:$0xff] }
  0x2c   :  { %497 = vmatpush3.msra.mxu1 %v147_v5  ;;  %v239_v20 = vld [vmem:[#allocation5 + $0xf8] sm:$0xff]  ;;  %528 = vmatpush3.msra.mxu0 %v240_v19  ;;  %v238_v21 = vld [vmem:[#allocation5 + $0xf0] sm:$0xff]  ;;  %v237_v22 = vld [vmem:[#allocation5 + $0xe8] sm:$0xff]  ;;  %p672_p4 = por %p671_p3, %p670_p2 }
  0x2d   :  { %498 = vmatprep.subr.mxu1 %v696_v0  ;;  %529 = vmatprep.subr.mxu0 %v696_v0  ;;  %v236_v23 = vld [vmem:[#allocation5 + $0xe0] sm:$0xff]  ;;  %v235_v24 = vld [vmem:[#allocation5 + $0xd8] sm:$0xff]  ;;  %v234_v25 = vld [vmem:[#allocation5 + $0xd0] sm:$0xff] }
  0x2e   :  { %499 = vmatpush3.msra.mxu1 %v146_v6  ;;  %530 = vmatpush3.msra.mxu0 %v239_v20  ;;  %v233_v26 = vld [vmem:[#allocation5 + $0xc8] sm:$0xff]  ;;  %v232_v27 = vld [vmem:[#allocation5 + $0xc0] sm:$0xff]  ;;  %v231_v28 = vld [vmem:[#allocation5 + $0xb8] sm:$0xff]  ;;  %p673_p5 = pnand %p672_p4, %p666_p1 }
  0x2f   :  { %500 = vmatprep.subr.mxu1 %v696_v0  ;;  %531 = vmatprep.subr.mxu0 %v696_v0  ;;  %v230_v29 = vld [vmem:[#allocation5 + $0xb0] sm:$0xff]  ;;  %v229_v30 = vld [vmem:[#allocation5 + $0xa8] sm:$0xff]  ;;  %v228_v31 = vld [vmem:[#allocation5 + $0xa0] sm:$0xff] }
  0x30   :  { %501 = vmatpush3.msra.mxu1 %v145_v7  ;;  %532 = vmatpush3.msra.mxu0 %v238_v21  ;;  %v769_v35 = vld [vmem:[#allocation7] sm:$0xf]  ;;  %v227_v41 = vld [vmem:[#allocation5 + $0x98] sm:$0xff]  ;;  %v226_v42 = vld [vmem:[#allocation5 + $0x90] sm:$0xff] }
  0x31   :  { %502 = vmatprep.subr.mxu1 %v696_v0  ;;  %533 = vmatprep.subr.mxu0 %v696_v0  ;;  %v58_v36 = vrot.slane %v769_v35, %v57_v34  ;;  %v225_v43 = vld [vmem:[#allocation5 + $0x88] sm:$0xff]  ;;  %v341_v44 = vld [vmem:[#allocation5 + $0x180] sm:$0xff]  ;;  %v340_v45 = vld [vmem:[#allocation5 + $0x178] sm:$0xff]  ;;  %v153_v51 = vrot.slane %v769_v35, %v152_v50  ;;  %v244_v4 = vrot.slane %v769_v35, %v243_v3 }
  0x32   :  { %503 = vmatpush3.msra.mxu1 %v144_v8  ;;  %534 = vmatpush3.msra.mxu0 %v237_v22  ;;  %v339_v46 = vld [vmem:[#allocation5 + $0x170] sm:$0xff]  ;;  %v338_v47 = vld [vmem:[#allocation5 + $0x168] sm:$0xff]  ;;  %v337_v48 = vld [vmem:[#allocation5 + $0x160] sm:$0xff] }
  0x33   :  { %504 = vmatprep.subr.mxu1 %v696_v0  ;;  %535 = vmatprep.subr.mxu0 %v696_v0  ;;  %v336_v49 = vld [vmem:[#allocation5 + $0x158] sm:$0xff]  ;;  %v335_v56 = vld [vmem:[#allocation5 + $0x150] sm:$0xff]  ;;  %v334_v57 = vld [vmem:[#allocation5 + $0x148] sm:$0xff] }
  0x34   :  { %505 = vmatpush3.msra.mxu1 %v143_v9  ;;  %536 = vmatpush3.msra.mxu0 %v236_v23  ;;  %v333_v58 = vld [vmem:[#allocation5 + $0x140] sm:$0xff]  ;;  %v332_v59 = vld [vmem:[#allocation5 + $0x138] sm:$0xff]  ;;  %v331_v60 = vld [vmem:[#allocation5 + $0x130] sm:$0xff] }
  0x35   :  { %506 = vmatprep.subr.mxu1 %v696_v0  ;;  %537 = vmatprep.subr.mxu0 %v696_v0  ;;  %v330_v61 = vld [vmem:[#allocation5 + $0x128] sm:$0xff]  ;;  %v329_v62 = vld [vmem:[#allocation5 + $0x120] sm:$0xff]  ;;  %v328_v63 = vld [vmem:[#allocation5 + $0x118] sm:$0xff] }
  0x36   :  { %507 = vmatpush3.msra.mxu1 %v142_v10  ;;  %538 = vmatpush3.msra.mxu0 %v235_v24  ;;  %v327_v1 = vld [vmem:[#allocation5 + $0x110] sm:$0xff]  ;;  %v326_v2 = vld [vmem:[#allocation5 + $0x108] sm:$0xff] }
  0x37   :  { %508 = vmatprep.subr.mxu1 %v696_v0  ;;  %539 = vmatprep.subr.mxu0 %v696_v0 }
  0x38   :  { %509 = vmatpush3.msra.mxu1 %v141_v11  ;;  %540 = vmatpush3.msra.mxu0 %v234_v25 }
  0x39   :  { %510 = vmatprep.subr.mxu1 %v696_v0  ;;  %541 = vmatprep.subr.mxu0 %v696_v0 }
  0x3a   :  { %511 = vmatpush3.msra.mxu1 %v140_v12  ;;  %542 = vmatpush3.msra.mxu0 %v233_v26 }
  0x3b   :  { %512 = vmatprep.subr.mxu1 %v696_v0  ;;  %543 = vmatprep.subr.mxu0 %v696_v0 }
  0x3c   :  { %513 = vmatpush3.msra.mxu1 %v139_v13  ;;  %544 = vmatpush3.msra.mxu0 %v232_v27 }
  0x3d   :  { %514 = vmatprep.subr.mxu1 %v696_v0  ;;  %545 = vmatprep.subr.mxu0 %v696_v0 }
  0x3e   :  { %515 = vmatpush3.msra.mxu1 %v138_v14  ;;  %546 = vmatpush3.msra.mxu0 %v231_v28 }
  0x3f   :  { %516 = vmatprep.subr.mxu1 %v696_v0  ;;  %547 = vmatprep.subr.mxu0 %v696_v0 }
  0x40   :  { %517 = vmatpush3.msra.mxu1 %v137_v15  ;;  %548 = vmatpush3.msra.mxu0 %v230_v29 }
  0x41   :  { %518 = vmatprep.subr.mxu1 %v696_v0  ;;  %549 = vmatprep.subr.mxu0 %v696_v0 }
  0x42   :  { %519 = vmatpush3.msra.mxu1 %v136_v16  ;;  %550 = vmatpush3.msra.mxu0 %v229_v30 }
  0x43   :  { %520 = vmatprep.subr.mxu1 %v696_v0  ;;  %551 = vmatprep.subr.mxu0 %v696_v0 }
  0x44   :  { %521 = vmatpush3.msra.mxu1 %v135_v17  ;;  %552 = vmatpush3.msra.mxu0 %v228_v31 }
  0x45   :  { %522 = vmatprep.subr.mxu1 %v696_v0  ;;  %553 = vmatprep.subr.mxu0 %v696_v0 }
  0x46   :  { %523 = vmatpush3.msra.mxu1 %v134_v18  ;;  %554 = vmatpush3.msra.mxu0 %v227_v41 }
  0x47   :  { %562 = vmatprep.subr.mxu1 %v696_v0  ;;  %555 = vmatprep.subr.mxu0 %v696_v0 }
  0x48   :  { %556 = vmatpush3.msra.mxu0 %v226_v42 }
  0x49   :  { %557 = vmatprep.subr.mxu0 %v696_v0 }
  0x4a   :  { %558 = vmatpush3.msra.mxu0 %v225_v43 }
  0xe9   :  { %v129_v37 = vpop.f32.mrf.mxu0 }
  0xea   :  { %v130_v38 = vadd.f32 %v129_v37, %v58_v36 }
  0xeb   :  { %v491_v39 = vpop.f32.mrf.mxu0 }
  0xec   :  { %v133_v40 = vmax.f32 %v130_v38, 0.0 }
  0xee   :  { %525 = vmatmul.mubr.f32.vlgmr.msra.gmra.mxu1 %v133_v40 }
  0xef   :  { %594 = vmatprep.mubr.msk.f32.mxu1 %vm697_vm0, %v696_v0  ;;  %563 = vmatpush3.msra.mxu1 %v341_v44 }
  0xf0   :  { %564 = vmatprep.subr.mxu1 %v696_v0 }
  0xf1   :  { %565 = vmatpush3.msra.mxu1 %v340_v45 }
  0xf2   :  { %566 = vmatprep.subr.mxu1 %v696_v0 }
  0xf3   :  { %567 = vmatpush3.msra.mxu1 %v339_v46 }
  0xf4   :  { %568 = vmatprep.subr.mxu1 %v696_v0 }
  0xf5   :  { %569 = vmatpush3.msra.mxu1 %v338_v47 }
  0xf6   :  { %570 = vmatprep.subr.mxu1 %v696_v0 }
  0xf7   :  { %571 = vmatpush3.msra.mxu1 %v337_v48 }
  0xf8   :  { %572 = vmatprep.subr.mxu1 %v696_v0 }
  0xf9   :  { %573 = vmatpush3.msra.mxu1 %v336_v49 }
  0xfa   :  { %574 = vmatprep.subr.mxu1 %v696_v0 }
  0xfb   :  { %575 = vmatpush3.msra.mxu1 %v335_v56 }
  0xfc   :  { %576 = vmatprep.subr.mxu1 %v696_v0 }
  0xfd   :  { %577 = vmatpush3.msra.mxu1 %v334_v57 }
  0xfe   :  { %578 = vmatprep.subr.mxu1 %v696_v0 }
  0xff   :  { %579 = vmatpush3.msra.mxu1 %v333_v58 }
 0x100   :  { %580 = vmatprep.subr.mxu1 %v696_v0 }
 0x101   :  { %581 = vmatpush3.msra.mxu1 %v332_v59 }
 0x102   :  { %582 = vmatprep.subr.mxu1 %v696_v0 }
 0x103   :  { %583 = vmatpush3.msra.mxu1 %v331_v60 }
 0x104   :  { %584 = vmatprep.subr.mxu1 %v696_v0 }
 0x105   :  { %585 = vmatpush3.msra.mxu1 %v330_v61 }
 0x106   :  { %586 = vmatprep.subr.mxu1 %v696_v0 }
 0x107   :  { %587 = vmatpush3.msra.mxu1 %v329_v62 }
 0x108   :  { %588 = vmatprep.subr.mxu1 %v696_v0 }
 0x109   :  { %589 = vmatpush3.msra.mxu1 %v328_v63 }
 0x10a   :  { %590 = vmatprep.subr.mxu1 %v696_v0 }
 0x10b   :  { %591 = vmatpush3.msra.mxu1 %v327_v1 }
 0x10c   :  { %592 = vmatprep.subr.mxu1 %v696_v0  ;;  %v343_v0 = vrot.slane %v769_v35, 3 }
 0x10d   :  { %593 = vmatpush3.msra.mxu1 %v326_v2 }
 0x1ae   :  { %v220_v52 = vpop.f32.mrf.mxu1 }
 0x1af   :  { %v221_v53 = vadd.f32 %v220_v52, %v153_v51 }
 0x1b0   :  { %v526_v54 = vpop.f32.mrf.mxu1 }
 0x1b1   :  { %v224_v55 = vmax.f32 %v221_v53, 0.0 }
 0x1b3   :  { %560 = vmatmul.mubr.f32.vlgmr.msra.gmra.mxu0 %v224_v55 }
 0x273   :  { %v311_v5 = vpop.f32.mrf.mxu0 }
 0x274   :  { %v312_v6 = vadd.f32 %v311_v5, %v244_v4 }
 0x275   :  { %v561_v7 = vpop.f32.mrf.mxu0 }
 0x276   :  { %v315_v8 = vmax.f32 %v312_v6, 0.0 }
 0x278   :  { %v317_v9 = vsel %vm316_vm2, %v315_v8, 0.0 }
 0x279   :  { %v318_v10 = vrot.slane %v317_v9, 4 }
 0x27b   :  { %v319_v11 = vadd.f32 %v318_v10, %v317_v9 }
 0x27d   :  { %v320_v12 = vrot.slane %v319_v11, 2 }
 0x27f   :  { %v321_v13 = vadd.f32 %v320_v12, %v319_v11 }
 0x281   :  { %v322_v14 = vrot.slane %v321_v13, 1 }
 0x283   :  { %v323_v15 = vadd.f32 %v322_v14, %v321_v13 }
 0x285   :  { %v325_v16 = vmul.f32 0.5, %v323_v15 }
 0x287   :  { %595 = vmatmul.mubr.f32.vlgmr.msra.gmra.mxu1 %v325_v16 }
 0x347   :  { %v411_v17 = vpop.f32.mrf.mxu1 }
 0x348   :  { %v412_v18 = vadd.f32 %v411_v17, %v343_v0 }
 0x349   :  { %v596_v19 = vpop.f32.mrf.mxu1 }
 0x34a   :  { %416 = vst.msk [vmem:[#allocation8] sm:$0x1] %vm415_vm3, %v412_v18 }
 0x34b   :  { %676 = shalt.err (!%p673_p5)
}
 0x34c   :  { %426 = dma.vmem_to_hbm [thread:$0]  %s424_s2, 16, %s802_s3, [#allocation4]  }
 0x34d   :  { %689 = dma.done.wait [#allocation4], 16  }
 0x34e   :  { %690 = vsyncadd [#allocation4], 4294967280 }
 0x34f   :  { %430 = vsyncpa [#allocation3], 1 }
 0x350   :  { %431 = vsyncpa [#allocation6], 1 }
 0x351   :  { %432 = vsyncpa [#allocation4], 1 }

</bundles_post_ra>
